<compile_context>
chip_gen: v6e
topology: v6e:2x2x1
jax: 0.10.0
libtpu: 0.0.40
codegen_flags: <defaults>
</compile_context>

<pallas_src>
import math
import functools

import numpy as np
import jax
import jax.numpy as jnp
from jax import lax
from jax.experimental import pallas as pl
from jax.experimental.pallas import tpu as pltpu


# Finite "-inf" for masked scores (robust against exp(-inf - -inf) NaNs).
_MASK_VALUE = -0.7 * float(np.finfo(np.float32).max)


# --------------------------------------------------------------------------
# Kernel 1: fused shared K/V projection (one (tk, D) @ (D, 2*Hd) matmul).
# --------------------------------------------------------------------------
def _kv_proj_kernel(x_ref, wkv_ref, k_ref, v_ref, *, head_dim):
    kv = jnp.dot(x_ref[0], wkv_ref[...], preferred_element_type=jnp.float32)
    k_ref[0] = kv[:, :head_dim].astype(k_ref.dtype)
    v_ref[0] = kv[:, head_dim:].astype(v_ref.dtype)


# --------------------------------------------------------------------------
# Kernel 2: fused Q projection + causal flash attention (+ optional out proj).
# --------------------------------------------------------------------------
def _flash_mqa_kernel(*refs, n_heads, head_dim, tq, tk, compute_dtype,
                      fuse_wo, exact_recip):
    if fuse_wo:
        (x_ref, wq_ref, k_ref, v_ref, wo_ref, o_ref,
         q_scr, m_scr, l_scr, acc_scr, attn_scr) = refs
    else:
        (x_ref, wq_ref, k_ref, v_ref, o_ref,
         q_scr, m_scr, l_scr, acc_scr) = refs

    qi = pl.program_id(1)
    kvi = pl.program_id(2)
    nkv = pl.num_programs(2)
    q_start = qi * tq
    kv_start = kvi * tk

    # ---- init (once per (batch, q-tile)): project Q, reset softmax state ----
    @pl.when(kvi == 0)
    def _init():
        # ONE (tq, D) @ (D, D) matmul; 1/sqrt(head_dim) is pre-folded into wq^T.
        q_full = jnp.dot(x_ref[0], wq_ref[...],
                         preferred_element_type=jnp.float32)          # (tq, D)
        # Scatter per-head column blocks into head-major rows so the scores /
        # PV matmuls run with M = n_heads * tq (better MXU fill, single push).
        for h in range(n_heads):
            q_scr[h * tq:(h + 1) * tq, :] = (
                q_full[:, h * head_dim:(h + 1) * head_dim].astype(q_scr.dtype))
        m_scr[...] = jnp.full_like(m_scr, -jnp.inf)
        l_scr[...] = jnp.zeros_like(l_scr)
        acc_scr[...] = jnp.zeros_like(acc_scr)

    # ---- online-softmax update (masked / unmasked variants) -----------------
    def _attend(apply_mask):
        k = k_ref[0]                                    # (tk, Hd)
        v = v_ref[0]                                    # (tk, Hd)
        q = q_scr[...]                                  # (H*tq, Hd)
        # contract head_dim against head_dim -> (H*tq, tk); no k transpose
        s = lax.dot_general(q, k, (((1,), (1,)), ((), ())),
                            preferred_element_type=jnp.float32)
        if apply_mask:
            row = lax.broadcasted_iota(jnp.int32, (tq, tk), 0) + q_start
            col = lax.broadcasted_iota(jnp.int32, (tq, tk), 1) + kv_start
            keep = col <= row                           # (tq, tk), same per head
            s = jnp.where(keep[None, :, :],
                          s.reshape(n_heads, tq, tk),
                          _MASK_VALUE).reshape(n_heads * tq, tk)
        m_prev = m_scr[...]                             # (H*tq, 1)
        m_new = jnp.maximum(m_prev, jnp.max(s, axis=-1, keepdims=True))
        alpha = jnp.exp(m_prev - m_new)                 # f32
        if jnp.dtype(compute_dtype) == jnp.dtype(jnp.float32):
            p = jnp.exp(s - m_new)                      # f32 parity path
        else:
            # bf16 exponent: ~2x EUP throughput on v6e/v7x and p feeds the
            # bf16 PV matmul directly (row-sum is still accumulated in f32).
            p = jnp.exp((s - m_new).astype(compute_dtype))
        l_scr[...] = alpha * l_scr[...] + jnp.sum(
            p.astype(jnp.float32), axis=-1, keepdims=True)
        acc_scr[...] = alpha * acc_scr[...] + jnp.dot(
            p, v, preferred_element_type=jnp.float32)
        m_scr[...] = m_new

    # Interior kv tiles (entirely below the diagonal): no mask work at all.
    @pl.when(kv_start + tk - 1 <= q_start)
    def _interior():
        _attend(apply_mask=False)

    # Diagonal / boundary tiles: masked path. Fully-future tiles run neither.
    @pl.when(jnp.logical_and(kv_start + tk - 1 > q_start,
                             kv_start <= q_start + tq - 1))
    def _diagonal():
        _attend(apply_mask=True)

    # ---- finalize (once per (batch, q-tile)): normalize (+ output proj) -----
    @pl.when(kvi == nkv - 1)
    def _finalize():
        if exact_recip:
            inv_l = 1.0 / l_scr[...]                    # exact for f32 parity
        else:
            inv_l = pl.reciprocal(l_scr[...], approx=True)   # EUP slot
        norm = acc_scr[...] * inv_l                     # (H*tq, Hd) f32
        if fuse_wo:
            # un-interleave head-major rows into (tq, D), then project.
            for h in range(n_heads):
                attn_scr[:, h * head_dim:(h + 1) * head_dim] = (
                    norm[h * tq:(h + 1) * tq, :].astype(attn_scr.dtype))
            o_ref[0] = jnp.dot(attn_scr[...], wo_ref[...],
                               preferred_element_type=jnp.float32
                               ).astype(o_ref.dtype)
        else:
            for h in range(n_heads):
                o_ref[0, :, h * head_dim:(h + 1) * head_dim] = (
                    norm[h * tq:(h + 1) * tq, :].astype(o_ref.dtype))


# --------------------------------------------------------------------------
# Kernel 3 (large-D path): output projection, tiled over the N dim of wo^T.
# --------------------------------------------------------------------------
def _out_proj_kernel(a_ref, w_ref, o_ref):
    o_ref[0] = jnp.dot(a_ref[0], w_ref[...],
                       preferred_element_type=jnp.float32).astype(o_ref.dtype)


# --------------------------------------------------------------------------
# Tiling helpers.
# --------------------------------------------------------------------------
def _choose_tile(n, target, align):
    """Largest tile <= target dividing n, aligned to the dtype sublane packing."""
    if n <= target:
        return n
    for t in range(target, align - 1, -1):
        if n % t == 0 and t % align == 0:
            return t
    for t in range(target, 7, -1):            # relax to the f32 sublane floor
        if n % t == 0 and t % 8 == 0:
            return t
    # TODO(synk): pad + mask a ragged last tile instead of the tile = n fallback.
    return n


def _choose_lane_tile(n, target=512):
    """Largest lane-aligned (multiple of 128) tile <= target dividing n."""
    if n <= target:
        return n
    t = target - (target % 128)
    while t >= 128:
        if n % t == 0:
            return t
        t -= 128
    return n


def prepare_mqa_weights(wq, wk, wv, wo, *, n_heads, compute_dtype=jnp.bfloat16):
    """One-time weight preparation (transpose / fuse / scale-fold).

    Under jit with constant weights this folds away; otherwise call it once and
    reuse the results rather than re-preparing on every forward call.
    """
    d_model = wq.shape[0]
    head_dim = d_model // n_heads
    scale = 1.0 / math.sqrt(head_dim)
    wqT = (wq.T * scale).astype(compute_dtype)                      # (D, D)
    wkv = jnp.concatenate([wk, wv], axis=1).astype(compute_dtype)   # (D, 2*Hd)
    woT = wo.T.astype(compute_dtype)                                # (D, D)
    return wqT, wkv, woT


# --------------------------------------------------------------------------
# Wrapper.
# --------------------------------------------------------------------------
def ropeless_mqa(x, wq, wk, wv, wo, *, n_heads,
                 compute_dtype=jnp.bfloat16,
                 out_dtype=jnp.float32,
                 q_block=256, kv_block=256,
                 fuse_output_proj=None,
                 single_buffer_weights=True,
                 vmem_limit_bytes=None):
    """Forward pass of RopelessMQA (eval mode).

    compute_dtype: matmul-input / exp dtype (bf16 recommended on v5e/v6e/v7x;
      accumulation and softmax running state stay f32). f32 gives module parity.
    vmem_limit_bytes: leave None for the compiler default; if set, use
      generation-appropriate values (~48 MiB on v7x, up to ~96-112 MiB v5e/v6e).
    """
    B, S, D = x.shape
    assert D % n_heads == 0
    head_dim = D // n_heads

    align = 16 if jnp.dtype(compute_dtype) == jnp.dtype(jnp.bfloat16) else 8
    # Cap the head-batched M dimension (target n_heads*tq ~ 512-1024) to bound
    # the (H*tq, tk) score/p transients and the f32 accumulator.
    q_target = max(64, q_block // max(1, n_heads // 4))
    tq = _choose_tile(S, q_target, align)
    tk = _choose_tile(S, kv_block, align)
    nq = S // tq
    nkv = S // tk

    if fuse_output_proj is None:
        # Keep wo^T out of the attention kernel for large D (v7x VMEM budget).
        fuse_output_proj = D <= 1024
    exact_recip = jnp.dtype(compute_dtype) == jnp.dtype(jnp.float32)

    wqT, wkv, woT = prepare_mqa_weights(
        wq, wk, wv, wo, n_heads=n_heads, compute_dtype=compute_dtype)
    xc = x.astype(compute_dtype)

    def _const_weight_spec(shape, index_map, single_buffer):
        # Constant-index weight blocks: a second pipeline buffer is a useless
        # duplicate copy; request a single buffer when supported.
        if single_buffer:
            return pl.BlockSpec(shape, index_map, pipeline_mode=pl.Buffered(1))
        return pl.BlockSpec(shape, index_map)

    def _forward(single_buffer):
        # ---------------- Kernel 1: shared K/V projection --------------------
        k, v = pl.pallas_call(
            functools.partial(_kv_proj_kernel, head_dim=head_dim),
            out_shape=(jax.ShapeDtypeStruct((B, S, head_dim), compute_dtype),
                       jax.ShapeDtypeStruct((B, S, head_dim), compute_dtype)),
            grid_spec=pltpu.PrefetchScalarGridSpec(
                num_scalar_prefetch=0,
                grid=(B, nkv),
                in_specs=[
                    pl.BlockSpec((1, tk, D), lambda b, i: (b, i, 0)),      # x
                    _const_weight_spec((D, 2 * head_dim),
                                       lambda b, i: (0, 0), single_buffer),  # [wk|wv]
                ],
                out_specs=[
                    pl.BlockSpec((1, tk, head_dim), lambda b, i: (b, i, 0)),
                    pl.BlockSpec((1, tk, head_dim), lambda b, i: (b, i, 0)),
                ],
            ),
            compiler_params=pltpu.CompilerParams(
                dimension_semantics=("parallel", "parallel"),
                vmem_limit_bytes=vmem_limit_bytes),
        )(xc, wkv)

        # ---------------- Kernel 2: flash MQA attention ----------------------
        # Clamp the kv block index so fully-future tiles are never fetched
        # (repeated block index => no new DMA); compute is skipped by pl.when.
        def kv_index_map(b, qi, ki):
            return (b, jnp.minimum(ki, (qi * tq + tq - 1) // tk), 0)

        in_specs = [
            pl.BlockSpec((1, tq, D), lambda b, qi, ki: (b, qi, 0)),        # x
            _const_weight_spec((D, D), lambda b, qi, ki: (0, 0),
                               single_buffer),                             # wq^T (scaled)
            pl.BlockSpec((1, tk, head_dim), kv_index_map),                 # k
            pl.BlockSpec((1, tk, head_dim), kv_index_map),                 # v
        ]
        scratch = [
            pltpu.VMEM((n_heads * tq, head_dim), compute_dtype),   # Q (head-major)
            pltpu.VMEM((n_heads * tq, 1), jnp.float32),            # running max
            pltpu.VMEM((n_heads * tq, 1), jnp.float32),            # running denom
            pltpu.VMEM((n_heads * tq, head_dim), jnp.float32),     # accumulator
        ]
        operands = [xc, wqT, k, v]
        if fuse_output_proj:
            in_specs.append(_const_weight_spec((D, D), lambda b, qi, ki: (0, 0),
                                               single_buffer))             # wo^T
            scratch.append(pltpu.VMEM((tq, D), compute_dtype))     # attn staging
            operands.append(woT)
            attn_out_dtype = out_dtype
        else:
            attn_out_dtype = compute_dtype

        kernel = functools.partial(
            _flash_mqa_kernel, n_heads=n_heads, head_dim=head_dim, tq=tq,
            tk=tk, compute_dtype=compute_dtype, fuse_wo=fuse_output_proj,
            exact_recip=exact_recip)

        attn = pl.pallas_call(
            kernel,
            out_shape=jax.ShapeDtypeStruct((B, S, D), attn_out_dtype),
            grid_spec=pltpu.PrefetchScalarGridSpec(
                num_scalar_prefetch=0,
                grid=(B, nq, nkv),
                in_specs=in_specs,
                out_specs=pl.BlockSpec((1, tq, D), lambda b, qi, ki: (b, qi, 0)),
                scratch_shapes=scratch,
            ),
            compiler_params=pltpu.CompilerParams(
                dimension_semantics=("parallel", "parallel", "arbitrary"),
                vmem_limit_bytes=vmem_limit_bytes),
        )(*operands)

        if fuse_output_proj:
            return attn

        # ------------- Kernel 3: output projection (large-D path) ------------
        tn = _choose_lane_tile(D)
        nn = D // tn
        # TODO(synk): also tile the K (= D) dimension with an accumulator for
        # very large d_model instead of holding (D, tn) wo^T blocks resident.
        return pl.pallas_call(
            _out_proj_kernel,
            out_shape=jax.ShapeDtypeStruct((B, S, D), out_dtype),
            grid_spec=pltpu.PrefetchScalarGridSpec(
                num_scalar_prefetch=0,
                grid=(B, nq, nn),
                in_specs=[
                    pl.BlockSpec((1, tq, D), lambda b, i, j: (b, i, 0)),   # attn
                    pl.BlockSpec((D, tn), lambda b, i, j: (0, j)),         # wo^T
                ],
                out_specs=pl.BlockSpec((1, tq, tn), lambda b, i, j: (b, i, j)),
            ),
            compiler_params=pltpu.CompilerParams(
                dimension_semantics=("parallel", "parallel", "parallel"),
                vmem_limit_bytes=vmem_limit_bytes),
        )(attn, woT)

    if single_buffer_weights:
        try:
            return _forward(True)
        except Exception:
            # pipeline_mode=pl.Buffered(1) not supported by this jax/libtpu
            # combination -> fall back to default double-buffered weights.
            pass
    return _forward(False)


# --------------------------------------------------------------------------
# Pure-JAX reference (mirrors the PyTorch forward, eval mode).
# --------------------------------------------------------------------------
def ropeless_mqa_ref(x, wq, wk, wv, wo, *, n_heads):
    B, S, D = x.shape
    hd = D // n_heads
    q = x @ wq.T
    k = x @ wk
    v = x @ wv
    q = q.reshape(B, S, n_heads, hd).transpose(0, 2, 1, 3)          # (B,H,S,hd)
    k = jnp.broadcast_to(k[:, None], (B, n_heads, S, hd))
    v = jnp.broadcast_to(v[:, None], (B, n_heads, S, hd))
    scores = jnp.einsum('bhqd,bhkd->bhqk', q, k) / math.sqrt(hd)
    mask = jnp.triu(jnp.ones((S, S), bool), k=1)
    scores = jnp.where(mask[None, None], -jnp.inf, scores)
    w = jax.nn.softmax(scores, axis=-1)
    out = jnp.einsum('bhqk,bhkd->bhqd', w, v)
    out = out.transpose(0, 2, 1, 3).reshape(B, S, D)
    return out @ wo.T


if __name__ == "__main__":
    # Small shapes consistent with the module.
    B, S, D, H = 2, 8, 32, 4
    init_scale = 0.02

    key = jax.random.PRNGKey(0)
    kx, kq, kk, kv_, ko = jax.random.split(key, 5)
    x = jax.random.normal(kx, (B, S, D), dtype=jnp.float32)
    wq = init_scale * jax.random.normal(kq, (D, D), dtype=jnp.float32)
    wk = init_scale * jax.random.normal(kk, (D, D // H), dtype=jnp.float32)
    wv = init_scale * jax.random.normal(kv_, (D, D // H), dtype=jnp.float32)
    wo = init_scale * jax.random.normal(ko, (D, D), dtype=jnp.float32)

    ref = ropeless_mqa_ref(x, wq, wk, wv, wo, n_heads=H)

    # Full-precision config (module parity; exact reciprocal, f32 matmuls).
    out_f32 = jax.block_until_ready(
        ropeless_mqa(x, wq, wk, wv, wo, n_heads=H, compute_dtype=jnp.float32))
    assert jnp.allclose(out_f32, ref, atol=1e-4, rtol=1e-3), \
        "f32 kernel mismatch vs reference"

    # Mixed-precision config (bf16 matmul inputs / bf16 exp, f32 accumulation).
    out_bf16 = jax.block_until_ready(
        ropeless_mqa(x, wq, wk, wv, wo, n_heads=H, compute_dtype=jnp.bfloat16))
    assert jnp.allclose(out_bf16, ref, atol=2e-3, rtol=5e-2), \
        "bf16 kernel mismatch vs reference"

    # Split output-projection path (large-d_model / v7x configuration),
    # exercised here at small shapes for correctness.
    out_split = jax.block_until_ready(
        ropeless_mqa(x, wq, wk, wv, wo, n_heads=H, compute_dtype=jnp.bfloat16,
                     fuse_output_proj=False))
    assert jnp.allclose(out_split, ref, atol=2e-3, rtol=5e-2), \
        "split output-projection kernel mismatch vs reference"

    print("KERNEL_OK")
</pallas_src>

<mosaic_0001>
module attributes {stable_mosaic.version = 11 : i64} {
  func.func @_kv_proj_kernel(%arg0: i32, %arg1: i32, %arg2: memref<1x8x32xf32, #tpu.memory_space<vmem>>, %arg3: memref<32x16xf32, #tpu.memory_space<vmem>>, %arg4: memref<1x8x8xf32, #tpu.memory_space<vmem>>, %arg5: memref<1x8x8xf32, #tpu.memory_space<vmem>>) attributes {dimension_semantics = [#tpu.dimension_semantics<parallel>, #tpu.dimension_semantics<parallel>], iteration_bounds = array<i64: 2, 1>, scalar_prefetch = 0 : i64, scratch_operands = 0 : i64, tpu.core_type = #tpu.core_type<tc>, window_params = [{transform_indices = @transform_0, window_bounds = array<i64: 1, 8, 32>}, {pipeline_mode = #tpu.pipeline_mode<synchronous>, transform_indices = @transform_1, window_bounds = array<i64: 32, 16>}, {transform_indices = @transform_2, window_bounds = array<i64: 1, 8, 8>}, {transform_indices = @transform_3, window_bounds = array<i64: 1, 8, 8>}]} {
    %c0 = arith.constant 0 : index
    %c0_0 = arith.constant 0 : index
    %c0_1 = arith.constant 0 : index
    %0 = vector.load %arg2[%c0, %c0_0, %c0_1] : memref<1x8x32xf32, #tpu.memory_space<vmem>>, vector<1x8x32xf32>
    %1 = vector.shape_cast %0 : vector<1x8x32xf32> to vector<8x32xf32>
    %c0_2 = arith.constant 0 : index
    %c0_3 = arith.constant 0 : index
    %2 = vector.load %arg3[%c0_2, %c0_3] : memref<32x16xf32, #tpu.memory_space<vmem>>, vector<32x16xf32>
    %cst = arith.constant dense<0.000000e+00> : vector<8x16xf32>
    %3 = tpu.matmul %1, %2, %cst {dimension_numbers = #tpu.dot_dimension_numbers<[1], [0], [0], [1], [0, 0, 1, 1], [], []>} : vector<8x32xf32>, vector<32x16xf32>, vector<8x16xf32> -> vector<8x16xf32>
    %4 = vector.extract_strided_slice %3 {offsets = [0, 0], sizes = [8, 8], strides = [1, 1]} : vector<8x16xf32> to vector<8x8xf32>
    %c0_4 = arith.constant 0 : index
    %c0_5 = arith.constant 0 : index
    %c0_6 = arith.constant 0 : index
    %5 = vector.load %arg4[%c0_4, %c0_5, %c0_6] : memref<1x8x8xf32, #tpu.memory_space<vmem>>, vector<1x8x8xf32>
    %6 = vector.shape_cast %5 : vector<1x8x8xf32> to vector<8x8xf32>
    %7 = vector.shape_cast %4 : vector<8x8xf32> to vector<1x8x8xf32>
    tpu.vector_store %arg4[%c0_4, %c0_5, %c0_6], %7 {strides = array<i32>} : memref<1x8x8xf32, #tpu.memory_space<vmem>>, vector<1x8x8xf32>,
    %8 = vector.extract_strided_slice %3 {offsets = [0, 8], sizes = [8, 8], strides = [1, 1]} : vector<8x16xf32> to vector<8x8xf32>
    %c0_7 = arith.constant 0 : index
    %c0_8 = arith.constant 0 : index
    %c0_9 = arith.constant 0 : index
    %9 = vector.load %arg5[%c0_7, %c0_8, %c0_9] : memref<1x8x8xf32, #tpu.memory_space<vmem>>, vector<1x8x8xf32>
    %10 = vector.shape_cast %9 : vector<1x8x8xf32> to vector<8x8xf32>
    %11 = vector.shape_cast %8 : vector<8x8xf32> to vector<1x8x8xf32>
    tpu.vector_store %arg5[%c0_7, %c0_8, %c0_9], %11 {strides = array<i32>} : memref<1x8x8xf32, #tpu.memory_space<vmem>>, vector<1x8x8xf32>,
    return
  }
  func.func @transform_0(%arg0: i32, %arg1: i32) -> (i32, i32, i32) {
    %c0_i32 = arith.constant 0 : i32
    %c0_i32_0 = arith.constant 0 : i32
    return %arg0, %arg1, %c0_i32 : i32, i32, i32
  }
  func.func @transform_1(%arg0: i32, %arg1: i32) -> (i32, i32) {
    %c0_i32 = arith.constant 0 : i32
    %c0_i32_0 = arith.constant 0 : i32
    %c0_i32_1 = arith.constant 0 : i32
    return %c0_i32, %c0_i32_0 : i32, i32
  }
  func.func @transform_2(%arg0: i32, %arg1: i32) -> (i32, i32, i32) {
    %c0_i32 = arith.constant 0 : i32
    %c0_i32_0 = arith.constant 0 : i32
    return %arg0, %arg1, %c0_i32 : i32, i32, i32
  }
  func.func @transform_3(%arg0: i32, %arg1: i32) -> (i32, i32, i32) {
    %c0_i32 = arith.constant 0 : i32
    %c0_i32_0 = arith.constant 0 : i32
    return %arg0, %arg1, %c0_i32 : i32, i32, i32
  }
}

module attributes {stable_mosaic.version = 11 : i64} {
  func.func @_kv_proj_kernel(%arg0: i32, %arg1: i32, %arg2: memref<1x8x32xf32, #tpu.memory_space<vmem>>, %arg3: memref<32x16xf32, #tpu.memory_space<vmem>>, %arg4: memref<1x8x8xf32, #tpu.memory_space<vmem>>, %arg5: memref<1x8x8xf32, #tpu.memory_space<vmem>>) attributes {dimension_semantics = [#tpu.dimension_semantics<parallel>, #tpu.dimension_semantics<parallel>], iteration_bounds = array<i64: 2, 1>, scalar_prefetch = 0 : i64, scratch_operands = 0 : i64, tpu.core_type = #tpu.core_type<tc>, window_params = [{transform_indices = @transform_0, window_bounds = array<i64: 1, 8, 32>}, {pipeline_mode = #tpu.pipeline_mode<synchronous>, transform_indices = @transform_1, window_bounds = array<i64: 32, 16>}, {transform_indices = @transform_2, window_bounds = array<i64: 1, 8, 8>}, {transform_indices = @transform_3, window_bounds = array<i64: 1, 8, 8>}]} {
    %c0 = arith.constant 0 : index
    %c0_0 = arith.constant 0 : index
    %c0_1 = arith.constant 0 : index
    %0 = vector.load %arg2[%c0, %c0_0, %c0_1] : memref<1x8x32xf32, #tpu.memory_space<vmem>>, vector<1x8x32xf32>
    %1 = vector.shape_cast %0 : vector<1x8x32xf32> to vector<8x32xf32>
    %c0_2 = arith.constant 0 : index
    %c0_3 = arith.constant 0 : index
    %2 = vector.load %arg3[%c0_2, %c0_3] : memref<32x16xf32, #tpu.memory_space<vmem>>, vector<32x16xf32>
    %cst = arith.constant dense<0.000000e+00> : vector<8x16xf32>
    %3 = tpu.matmul %1, %2, %cst {dimension_numbers = #tpu.dot_dimension_numbers<[1], [0], [0], [1], [0, 0, 1, 1], [], []>} : vector<8x32xf32>, vector<32x16xf32>, vector<8x16xf32> -> vector<8x16xf32>
    %4 = vector.extract_strided_slice %3 {offsets = [0, 0], sizes = [8, 8], strides = [1, 1]} : vector<8x16xf32> to vector<8x8xf32>
    %c0_4 = arith.constant 0 : index
    %c0_5 = arith.constant 0 : index
    %c0_6 = arith.constant 0 : index
    %5 = vector.load %arg4[%c0_4, %c0_5, %c0_6] : memref<1x8x8xf32, #tpu.memory_space<vmem>>, vector<1x8x8xf32>
    %6 = vector.shape_cast %5 : vector<1x8x8xf32> to vector<8x8xf32>
    %7 = vector.shape_cast %4 : vector<8x8xf32> to vector<1x8x8xf32>
    tpu.vector_store %arg4[%c0_4, %c0_5, %c0_6], %7 {strides = array<i32>} : memref<1x8x8xf32, #tpu.memory_space<vmem>>, vector<1x8x8xf32>,
    %8 = vector.extract_strided_slice %3 {offsets = [0, 8], sizes = [8, 8], strides = [1, 1]} : vector<8x16xf32> to vector<8x8xf32>
    %c0_7 = arith.constant 0 : index
    %c0_8 = arith.constant 0 : index
    %c0_9 = arith.constant 0 : index
    %9 = vector.load %arg5[%c0_7, %c0_8, %c0_9] : memref<1x8x8xf32, #tpu.memory_space<vmem>>, vector<1x8x8xf32>
    %10 = vector.shape_cast %9 : vector<1x8x8xf32> to vector<8x8xf32>
    %11 = vector.shape_cast %8 : vector<8x8xf32> to vector<1x8x8xf32>
    tpu.vector_store %arg5[%c0_7, %c0_8, %c0_9], %11 {strides = array<i32>} : memref<1x8x8xf32, #tpu.memory_space<vmem>>, vector<1x8x8xf32>,
    return
  }
  func.func @transform_0(%arg0: i32, %arg1: i32) -> (i32, i32, i32) {
    %c0_i32 = arith.constant 0 : i32
    %c0_i32_0 = arith.constant 0 : i32
    return %arg0, %arg1, %c0_i32 : i32, i32, i32
  }
  func.func @transform_1(%arg0: i32, %arg1: i32) -> (i32, i32) {
    %c0_i32 = arith.constant 0 : i32
    %c0_i32_0 = arith.constant 0 : i32
    %c0_i32_1 = arith.constant 0 : i32
    return %c0_i32, %c0_i32_0 : i32, i32
  }
  func.func @transform_2(%arg0: i32, %arg1: i32) -> (i32, i32, i32) {
    %c0_i32 = arith.constant 0 : i32
    %c0_i32_0 = arith.constant 0 : i32
    return %arg0, %arg1, %c0_i32 : i32, i32, i32
  }
  func.func @transform_3(%arg0: i32, %arg1: i32) -> (i32, i32, i32) {
    %c0_i32 = arith.constant 0 : i32
    %c0_i32_0 = arith.constant 0 : i32
    return %arg0, %arg1, %c0_i32 : i32, i32, i32
  }
}

</mosaic_0001>

<bundles_post_ra>
// kernel: tpu_custom_call.1
= control target key start
LH: loop header
LB: loop body
LE: loop exit
PB: predicated region body
PF: predicated region fallthrough
CT: control target
= control target key end

     0   :  { %9 = vsyncpa [#allocation3], 0  ;;  %s814_s0 = inlined_call_operand.vmem [shape: f32[2,8,32], index: 0, kind: input, shape index: {}]   ;;  %s815_s1 = inlined_call_operand.vmem [shape: f32[32,16], index: 1, kind: input, shape index: {}]   ;;  %s816_s2 = inlined_call_operand.hbm [shape: f32[2,8,8], index: 2, kind: output, shape index: {0}]   ;;  %s817_s3 = inlined_call_operand.hbm [shape: f32[2,8,8], index: 3, kind: output, shape index: {1}]  }
   0x1   :  { %11 = vsyncpa [#allocation3 + $0x1], 0 }
   0x2   :  { %12 = vsyncpa [#allocation5], 0 }
   0x3   :  { %14 = vsyncpa [#allocation5 + $0x1], 0  ;;  %s655_s12 = smov 0   ;;  %s657_s13 = smov 0  }
   0x4   :  { %s659_s14 = smov 0   ;;  %s661_s15 = smov 0  }
   0x5   :  { %s663_s16 = smov 0   ;;  %s665_s17 = smov 0  }
   0x6 LB: > { %s428_s18 = sadd.s32 4294967295, %s628_s17   ;;  %s429_s19 = sadd.s32 4294967294, %s628_s17   ;;  %s628_s17 = sphi %s665_s17, %s20_s17   ;;  %s624_s16 = sphi %s663_s16, %s824_s16   ;;  %s620_s15 = sphi %s661_s15, %s823_s15   ;;  %s616_s14 = sphi %s659_s14, %s822_s14   ;;  %s612_s13 = sphi %s657_s13, %s821_s13   ;;  %s608_s12 = sphi %s655_s12, %s820_s12  }
   0x7   : > { %s32_s20 = sadd.s32 1, %s624_s16  ;;  %s90_s21 = sadd.s32 1, %s616_s14 }
   0x8   : > { %p34_p0 = scmp.ge.s32.totalorder %s32_s20, 2  ;;  %p100_p1 = scmp.ne.s32.totalorder %s616_s14, %s612_s13 }
   0x9   : > { %p101_p2 = scmp.eq.s32.totalorder %s428_s18, 1  ;;  %p106_p3 = scmp.ne.s32.totalorder %s612_s13, %s608_s12 }
   0xa   : > { %s826_s20 = smov (%p34_p0, %s32_s20), 0  ;;  %p107_p5 = scmp.eq.s32.totalorder %s429_s19, 1 }
   0xb   : > { %p695_p4 = por %p101_p2, %p100_p1  ;;  %s85_s23 = ssub.s32 %s624_s16, %s826_s20 }
   0xc   : > { %p432_p6 = scmp.ge.s32.totalorder %s628_s17, 1  ;;  %p88_p7 = scmp.eq.s32.totalorder %s85_s23, 0 }
   0xd   : > { %p702_p8 = por %p107_p5, %p106_p3  ;;  %p166_p9 = scmp.lt.s32.totalorder %s628_s17, 3 }
   0xe   : > { %s708_s25 = scalar_select %p88_p7, %s616_s14, %s90_s21  }
   0xf   : > { %p167_p10 = pnand %p432_p6, %p166_p9 }
  0x10   : > { %p197_p11 = scmp.lt.s32.totalorder (!%p167_p10), %s620_s15, 1  ;;  %s728_s18 = sand.u32 (!%p167_p10), 1, %s612_s13  }
  0x11   : > { %170 = sbr.rel (%p167_p10) target bundleno = 352 (0x160), region = 28  ;;  %s433_s19 = sshll.u32 (!%p167_p10), %s728_s18, 3 }
  0x12   : > { %s439_s21 = sshll.u32 (!%p167_p10), %s620_s15, 7  ;;  %s189_s23 = scalar_lea.vmem (!%p167_p10), [#allocation2], %s433_s19 }
  0x13   : > { %s310_s26 = sshll.u32 (!%p167_p10), %s189_s23, 4  ;;  %s739_s29 = scalar_lea.hbm (!%p167_p10), %s816_s2, %s439_s21  ;;  %s741_s26 = int_to_ptr.vmem [resolvable:$true] %s310_s26 }
  0x14   : > { %s291_s4 = scalar_lea.sflag (!%p167_p10), [#allocation3], %s728_s18  ;;  %s522_s5 = scalar_lea.vmem (!%p167_p10), %s741_s26, 128 }
  0x15   : > { %p523_p12 = scmp.ne.s32.totalorder (!%p167_p10), %s741_s26, %s522_s5 }
  0x16   : > { %v208_v0 = vld [vmem:[%s815_s1 + $0x18] sm:$0xff]  ;;  %v630_v1 = vmov 0.0   ;;  %v207_v2 = vld [vmem:[%s815_s1 + $0x10] sm:$0xff]  ;;  %vm631_vm0 = vmmov 0   ;;  %s198_s30 = scalar_select %p197_p11, %s620_s15, 1  ;;  %v206_v3 = vld [vmem:[%s815_s1 + $0x8] sm:$0xff] }
  0x17   : > { %448 = vmatprep.subr.mxu0 %v630_v1  ;;  %456 = vmatprep.mubr.msk.f32.mxu0 %vm631_vm0, %v630_v1  ;;  %v205_v4 = vld [vmem:[%s815_s1] sm:$0xff]  ;;  %vm209_vm1 = vcmask 261120   ;;  %vm283_vm2 = vcmask 64512   ;;  %p524_p13 = pnand %p523_p12, %p695_p4 }
  0x18   : > { %449 = vmatpush3.msra.mxu0 %v208_v0  ;;  %s435_s6 = sshll.u32 %s198_s30, 3  ;;  %s632_s30 = smov 120  }
  0x19   : > { %450 = vmatprep.subr.mxu0 %v630_v1  ;;  %s203_s11 = scalar_lea.vmem %s814_s0, %s435_s6  ;;  %p525_p0 = pneg %p524_p13 }
  0x1a   : > { %451 = vmatpush3.msra.mxu0 %v207_v2  ;;  %v204_v5 = vld [vmem:[%s203_s11] sm:$0xff]  ;;  %s633_s6 = smov [#allocation2]  }
  0x1b   : > { %452 = vmatprep.subr.mxu0 %v630_v1  ;;  %s526_s7 = sshll.u32 %s633_s6, 4  ;;  %s527_s7 = int_to_ptr.vmem [resolvable:$false] %s526_s7 }
  0x1c   : > { %453 = vmatpush3.msra.mxu0 %v206_v3  ;;  %s528_s8 = scalar_lea.vmem %s527_s7, 256  ;;  %p529_p1 = scmp.lt.s32.totalorder %s741_s26, %s527_s7 }
  0x1d   : > { %454 = vmatprep.subr.mxu0 %v630_v1  ;;  %p530_p2 = scmp.lt.s32.totalorder %s528_s8, %s522_s5 }
  0x1e   : > { %455 = vmatpush3.msra.mxu0 %v205_v4 }
  0x1f   : > { %457 = vmatmul.mubr.msk.f32.vlgmr.msra.gmra.mxu0 %vm209_vm1, %v204_v5  ;;  %p531_p3 = por %p530_p2, %p529_p1 }
  0x21   : > { %p532_p5 = pnand %p531_p3, %p525_p0 }
  0xdf   : > { %v279_v6 = vpop.f32.mrf.mxu0 }
  0xe0   : > { %284 = vst.msk [vmem:[%s189_s23] sm:$0xff] %vm283_vm2, %v279_v6  ;;  %286 = vrot.lane.b32.xlu0 %v279_v6, %s632_s30 }
  0xe1   : > { %v458_v7 = vpop.f32.mrf.mxu0 }
  0xe2   : > { %535 = shalt.err (!%p532_p5)
}
  0xe3   : > { %s536_s9 = scalar_lea.hbm %s739_s29, 128  ;;  %s540_s23 = scalar_lea.hbm %s816_s2, 256 }
  0xe4   : > { %p537_p6 = scmp.ne.s32.totalorder %s739_s29, %s536_s9  ;;  %p541_p10 = scmp.lt.s32.totalorder %s739_s29, %s816_s2 }
  0xe5   : > { %p542_p11 = scmp.lt.s32.totalorder %s540_s23, %s536_s9 }
  0xe6   : > { %p538_p7 = pnand %p537_p6, %p695_p4 }
  0xe7   : > { %p543_p12 = por %p542_p11, %p541_p10 }
  0xe8   : > { %p539_p9 = pneg %p538_p7 }
  0xea   : > { %p544_p13 = pnand %p543_p12, %p539_p9 }
  0xec   : > { %547 = shalt.err (!%p544_p13)
}
  0xed   : > { %459 = dma.vmem_to_hbm [thread:$0]  (%p695_p4), %s741_s26, 128, %s739_s29, %s291_s4  }
  0xee   : > { %s196_s30 = scalar_lea.vmem [#allocation4], %s433_s19  ;;  %s772_s8 = scalar_lea.hbm %s817_s3, %s439_s21 }
  0xef   : > { %s324_s5 = sshll.u32 %s196_s30, 4  ;;  %s296_s9 = scalar_lea.sflag [#allocation5], %s728_s18  ;;  %s325_s5 = int_to_ptr.vmem [resolvable:$true] %s324_s5 }
  0xf0   : > { %s548_s10 = scalar_lea.vmem %s325_s5, 128  ;;  %s634_s26 = smov [#allocation4]  }
  0xf1   : > { %p549_p0 = scmp.ne.s32.totalorder %s325_s5, %s548_s10  ;;  %s552_s29 = sshll.u32 %s634_s26, 4  ;;  %s553_s29 = int_to_ptr.vmem [resolvable:$false] %s552_s29 }
  0xf2   : > { %s554_s19 = scalar_lea.vmem %s553_s29, 256  ;;  %p555_p3 = scmp.lt.s32.totalorder %s325_s5, %s553_s29 }
  0xf3   : > { %p550_p1 = pnand %p549_p0, %p695_p4  ;;  %p556_p5 = scmp.lt.s32.totalorder %s554_s19, %s548_s10 }
  0xf5   : > { %p551_p2 = pneg %p550_p1  ;;  %p557_p6 = por %p556_p5, %p555_p3 }
  0xf7   : > { %p558_p7 = pnand %p557_p6, %p551_p2 }
 0x152   : > { %v287_v8 = vpop.permute.xlu0 %286 }
 0x153   : > { %289 = vst.msk [vmem:[%s196_s30] sm:$0xff] %vm283_vm2, %v287_v8 }
 0x154   : > { %561 = shalt.err (!%p558_p7)
}
 0x155   : > { %s562_s15 = scalar_lea.hbm %s772_s8, 128  ;;  %s566_s4 = scalar_lea.hbm %s817_s3, 256 }
 0x156   : > { %p563_p9 = scmp.ne.s32.totalorder %s772_s8, %s562_s15  ;;  %p567_p12 = scmp.lt.s32.totalorder %s772_s8, %s817_s3 }
 0x157   : > { %p568_p13 = scmp.lt.s32.totalorder %s566_s4, %s562_s15 }
 0x158   : > { %p564_p10 = pnand %p563_p9, %p695_p4 }
 0x159   : > { %p569_p0 = por %p568_p13, %p567_p12 }
 0x15a   : > { %p565_p11 = pneg %p564_p10 }
 0x15c   : > { %p570_p1 = pnand %p569_p0, %p565_p11 }
 0x15e   : > { %573 = shalt.err (!%p570_p1)
}
 0x15f   : > { %460 = dma.vmem_to_hbm [thread:$0]  (%p695_p4), %s325_s5, 128, %s772_s8, %s296_s9  }
 0x160 PF: > { %p470_p2 = scmp.ge.s32.totalorder %s628_s17, 2  ;;  %s336_s27 = sand.u32 1, %s608_s12  }
 0x161   : > { %s337_s28 = scalar_lea.sflag [#allocation3], %s336_s27 }
 0x162   : > { %p464_p3 = pnand %p470_p2, %p702_p8 }
 0x164   : > { %p465_p5 = pneg %p464_p3 }
 0x166   : > { %599 = dma.done.wait (%p465_p5), %s337_s28, 128  }
 0x167   : > { %601 = vsyncadd (%p465_p5), %s337_s28, 4294967168  ;;  %s346_s30 = scalar_lea.sflag [#allocation5], %s336_s27 }
 0x168   : > { %603 = dma.done.wait (%p465_p5), %s346_s30, 128  }
 0x169   : > { %605 = vsyncadd (%p465_p5), %s346_s30, 4294967168  ;;  %s20_s17 = sadd.s32 1, %s628_s17   ;;  %s820_s12 = smov %s612_s13 }
 0x16a   : > { %p17_p6 = scmp.ge.s32.totalorder %s20_s17, 4   ;;  %s821_s13 = smov %s616_s14 }
 0x16b   : > { %s822_s14 = smov %s708_s25  ;;  %s823_s15 = smov %s624_s16 }
 0x16c   : > { %s824_s16 = smov %s826_s20  ;;  %19 = sbr.rel (!%p17_p6) target bundleno = 6 (0x6), region = 80 }
 0x171   :  { %351 = vsyncpa [#allocation3], 1 }
 0x172   :  { %353 = vsyncpa [#allocation3 + $0x1], 1 }
 0x173   :  { %354 = vsyncpa [#allocation5], 1 }
 0x174   :  { %356 = vsyncpa [#allocation5 + $0x1], 1 }

// kernel: tpu_custom_call.1
= control target key start
LH: loop header
LB: loop body
LE: loop exit
PB: predicated region body
PF: predicated region fallthrough
CT: control target
= control target key end

     0   :  { %9 = vsyncpa [#allocation3], 0  ;;  %s814_s0 = inlined_call_operand.vmem [shape: f32[2,8,32], index: 0, kind: input, shape index: {}]   ;;  %s815_s1 = inlined_call_operand.vmem [shape: f32[32,16], index: 1, kind: input, shape index: {}]   ;;  %s816_s2 = inlined_call_operand.hbm [shape: f32[2,8,8], index: 2, kind: output, shape index: {0}]   ;;  %s817_s3 = inlined_call_operand.hbm [shape: f32[2,8,8], index: 3, kind: output, shape index: {1}]  }
   0x1   :  { %11 = vsyncpa [#allocation3 + $0x1], 0 }
   0x2   :  { %12 = vsyncpa [#allocation5], 0 }
   0x3   :  { %14 = vsyncpa [#allocation5 + $0x1], 0  ;;  %s655_s12 = smov 0   ;;  %s657_s13 = smov 0  }
   0x4   :  { %s659_s14 = smov 0   ;;  %s661_s15 = smov 0  }
   0x5   :  { %s663_s16 = smov 0   ;;  %s665_s17 = smov 0  }
   0x6 LB: > { %s428_s18 = sadd.s32 4294967295, %s628_s17   ;;  %s429_s19 = sadd.s32 4294967294, %s628_s17   ;;  %s628_s17 = sphi %s665_s17, %s20_s17   ;;  %s624_s16 = sphi %s663_s16, %s824_s16   ;;  %s620_s15 = sphi %s661_s15, %s823_s15   ;;  %s616_s14 = sphi %s659_s14, %s822_s14   ;;  %s612_s13 = sphi %s657_s13, %s821_s13   ;;  %s608_s12 = sphi %s655_s12, %s820_s12  }
   0x7   : > { %s32_s20 = sadd.s32 1, %s624_s16  ;;  %s90_s21 = sadd.s32 1, %s616_s14 }
   0x8   : > { %p34_p0 = scmp.ge.s32.totalorder %s32_s20, 2  ;;  %p100_p1 = scmp.ne.s32.totalorder %s616_s14, %s612_s13 }
   0x9   : > { %p101_p2 = scmp.eq.s32.totalorder %s428_s18, 1  ;;  %p106_p3 = scmp.ne.s32.totalorder %s612_s13, %s608_s12 }
   0xa   : > { %s826_s20 = smov (%p34_p0, %s32_s20), 0  ;;  %p107_p5 = scmp.eq.s32.totalorder %s429_s19, 1 }
   0xb   : > { %p695_p4 = por %p101_p2, %p100_p1  ;;  %s85_s23 = ssub.s32 %s624_s16, %s826_s20 }
   0xc   : > { %p432_p6 = scmp.ge.s32.totalorder %s628_s17, 1  ;;  %p88_p7 = scmp.eq.s32.totalorder %s85_s23, 0 }
   0xd   : > { %p702_p8 = por %p107_p5, %p106_p3  ;;  %p166_p9 = scmp.lt.s32.totalorder %s628_s17, 3 }
   0xe   : > { %s708_s25 = scalar_select %p88_p7, %s616_s14, %s90_s21  }
   0xf   : > { %p167_p10 = pnand %p432_p6, %p166_p9 }
  0x10   : > { %p197_p11 = scmp.lt.s32.totalorder (!%p167_p10), %s620_s15, 1  ;;  %s728_s18 = sand.u32 (!%p167_p10), 1, %s612_s13  }
  0x11   : > { %170 = sbr.rel (%p167_p10) target bundleno = 352 (0x160), region = 28  ;;  %s433_s19 = sshll.u32 (!%p167_p10), %s728_s18, 3 }
  0x12   : > { %s439_s21 = sshll.u32 (!%p167_p10), %s620_s15, 7  ;;  %s189_s23 = scalar_lea.vmem (!%p167_p10), [#allocation2], %s433_s19 }
  0x13   : > { %s310_s26 = sshll.u32 (!%p167_p10), %s189_s23, 4  ;;  %s739_s29 = scalar_lea.hbm (!%p167_p10), %s816_s2, %s439_s21  ;;  %s741_s26 = int_to_ptr.vmem [resolvable:$true] %s310_s26 }
  0x14   : > { %s291_s4 = scalar_lea.sflag (!%p167_p10), [#allocation3], %s728_s18  ;;  %s522_s5 = scalar_lea.vmem (!%p167_p10), %s741_s26, 128 }
  0x15   : > { %p523_p12 = scmp.ne.s32.totalorder (!%p167_p10), %s741_s26, %s522_s5 }
  0x16   : > { %v208_v0 = vld [vmem:[%s815_s1 + $0x18] sm:$0xff]  ;;  %v630_v1 = vmov 0.0   ;;  %v207_v2 = vld [vmem:[%s815_s1 + $0x10] sm:$0xff]  ;;  %vm631_vm0 = vmmov 0   ;;  %s198_s30 = scalar_select %p197_p11, %s620_s15, 1  ;;  %v206_v3 = vld [vmem:[%s815_s1 + $0x8] sm:$0xff] }
  0x17   : > { %448 = vmatprep.subr.mxu0 %v630_v1  ;;  %456 = vmatprep.mubr.msk.f32.mxu0 %vm631_vm0, %v630_v1  ;;  %v205_v4 = vld [vmem:[%s815_s1] sm:$0xff]  ;;  %vm209_vm1 = vcmask 261120   ;;  %vm283_vm2 = vcmask 64512   ;;  %p524_p13 = pnand %p523_p12, %p695_p4 }
  0x18   : > { %449 = vmatpush3.msra.mxu0 %v208_v0  ;;  %s435_s6 = sshll.u32 %s198_s30, 3  ;;  %s632_s30 = smov 120  }
  0x19   : > { %450 = vmatprep.subr.mxu0 %v630_v1  ;;  %s203_s11 = scalar_lea.vmem %s814_s0, %s435_s6  ;;  %p525_p0 = pneg %p524_p13 }
  0x1a   : > { %451 = vmatpush3.msra.mxu0 %v207_v2  ;;  %v204_v5 = vld [vmem:[%s203_s11] sm:$0xff]  ;;  %s633_s6 = smov [#allocation2]  }
  0x1b   : > { %452 = vmatprep.subr.mxu0 %v630_v1  ;;  %s526_s7 = sshll.u32 %s633_s6, 4  ;;  %s527_s7 = int_to_ptr.vmem [resolvable:$false] %s526_s7 }
  0x1c   : > { %453 = vmatpush3.msra.mxu0 %v206_v3  ;;  %s528_s8 = scalar_lea.vmem %s527_s7, 256  ;;  %p529_p1 = scmp.lt.s32.totalorder %s741_s26, %s527_s7 }
  0x1d   : > { %454 = vmatprep.subr.mxu0 %v630_v1  ;;  %p530_p2 = scmp.lt.s32.totalorder %s528_s8, %s522_s5 }
  0x1e   : > { %455 = vmatpush3.msra.mxu0 %v205_v4 }
  0x1f   : > { %457 = vmatmul.mubr.msk.f32.vlgmr.msra.gmra.mxu0 %vm209_vm1, %v204_v5  ;;  %p531_p3 = por %p530_p2, %p529_p1 }
  0x21   : > { %p532_p5 = pnand %p531_p3, %p525_p0 }
  0xdf   : > { %v279_v6 = vpop.f32.mrf.mxu0 }
  0xe0   : > { %284 = vst.msk [vmem:[%s189_s23] sm:$0xff] %vm283_vm2, %v279_v6  ;;  %286 = vrot.lane.b32.xlu0 %v279_v6, %s632_s30 }
  0xe1   : > { %v458_v7 = vpop.f32.mrf.mxu0 }
  0xe2   : > { %535 = shalt.err (!%p532_p5)
}
  0xe3   : > { %s536_s9 = scalar_lea.hbm %s739_s29, 128  ;;  %s540_s23 = scalar_lea.hbm %s816_s2, 256 }
  0xe4   : > { %p537_p6 = scmp.ne.s32.totalorder %s739_s29, %s536_s9  ;;  %p541_p10 = scmp.lt.s32.totalorder %s739_s29, %s816_s2 }
  0xe5   : > { %p542_p11 = scmp.lt.s32.totalorder %s540_s23, %s536_s9 }
  0xe6   : > { %p538_p7 = pnand %p537_p6, %p695_p4 }
  0xe7   : > { %p543_p12 = por %p542_p11, %p541_p10 }
  0xe8   : > { %p539_p9 = pneg %p538_p7 }
  0xea   : > { %p544_p13 = pnand %p543_p12, %p539_p9 }
  0xec   : > { %547 = shalt.err (!%p544_p13)
}
  0xed   : > { %459 = dma.vmem_to_hbm [thread:$0]  (%p695_p4), %s741_s26, 128, %s739_s29, %s291_s4  }
  0xee   : > { %s196_s30 = scalar_lea.vmem [#allocation4], %s433_s19  ;;  %s772_s8 = scalar_lea.hbm %s817_s3, %s439_s21 }
  0xef   : > { %s324_s5 = sshll.u32 %s196_s30, 4  ;;  %s296_s9 = scalar_lea.sflag [#allocation5], %s728_s18  ;;  %s325_s5 = int_to_ptr.vmem [resolvable:$true] %s324_s5 }
  0xf0   : > { %s548_s10 = scalar_lea.vmem %s325_s5, 128  ;;  %s634_s26 = smov [#allocation4]  }
  0xf1   : > { %p549_p0 = scmp.ne.s32.totalorder %s325_s5, %s548_s10  ;;  %s552_s29 = sshll.u32 %s634_s26, 4  ;;  %s553_s29 = int_to_ptr.vmem [resolvable:$false] %s552_s29 }
  0xf2   : > { %s554_s19 = scalar_lea.vmem %s553_s29, 256  ;;  %p555_p3 = scmp.lt.s32.totalorder %s325_s5, %s553_s29 }
  0xf3   : > { %p550_p1 = pnand %p549_p0, %p695_p4  ;;  %p556_p5 = scmp.lt.s32.totalorder %s554_s19, %s548_s10 }
  0xf5   : > { %p551_p2 = pneg %p550_p1  ;;  %p557_p6 = por %p556_p5, %p555_p3 }
  0xf7   : > { %p558_p7 = pnand %p557_p6, %p551_p2 }
 0x152   : > { %v287_v8 = vpop.permute.xlu0 %286 }
 0x153   : > { %289 = vst.msk [vmem:[%s196_s30] sm:$0xff] %vm283_vm2, %v287_v8 }
 0x154   : > { %561 = shalt.err (!%p558_p7)
}
 0x155   : > { %s562_s15 = scalar_lea.hbm %s772_s8, 128  ;;  %s566_s4 = scalar_lea.hbm %s817_s3, 256 }
 0x156   : > { %p563_p9 = scmp.ne.s32.totalorder %s772_s8, %s562_s15  ;;  %p567_p12 = scmp.lt.s32.totalorder %s772_s8, %s817_s3 }
 0x157   : > { %p568_p13 = scmp.lt.s32.totalorder %s566_s4, %s562_s15 }
 0x158   : > { %p564_p10 = pnand %p563_p9, %p695_p4 }
 0x159   : > { %p569_p0 = por %p568_p13, %p567_p12 }
 0x15a   : > { %p565_p11 = pneg %p564_p10 }
 0x15c   : > { %p570_p1 = pnand %p569_p0, %p565_p11 }
 0x15e   : > { %573 = shalt.err (!%p570_p1)
}
 0x15f   : > { %460 = dma.vmem_to_hbm [thread:$0]  (%p695_p4), %s325_s5, 128, %s772_s8, %s296_s9  }
 0x160 PF: > { %p470_p2 = scmp.ge.s32.totalorder %s628_s17, 2  ;;  %s336_s27 = sand.u32 1, %s608_s12  }
 0x161   : > { %s337_s28 = scalar_lea.sflag [#allocation3], %s336_s27 }
 0x162   : > { %p464_p3 = pnand %p470_p2, %p702_p8 }
 0x164   : > { %p465_p5 = pneg %p464_p3 }
 0x166   : > { %599 = dma.done.wait (%p465_p5), %s337_s28, 128  }
 0x167   : > { %601 = vsyncadd (%p465_p5), %s337_s28, 4294967168  ;;  %s346_s30 = scalar_lea.sflag [#allocation5], %s336_s27 }
 0x168   : > { %603 = dma.done.wait (%p465_p5), %s346_s30, 128  }
 0x169   : > { %605 = vsyncadd (%p465_p5), %s346_s30, 4294967168  ;;  %s20_s17 = sadd.s32 1, %s628_s17   ;;  %s820_s12 = smov %s612_s13 }
 0x16a   : > { %p17_p6 = scmp.ge.s32.totalorder %s20_s17, 4   ;;  %s821_s13 = smov %s616_s14 }
 0x16b   : > { %s822_s14 = smov %s708_s25  ;;  %s823_s15 = smov %s624_s16 }
 0x16c   : > { %s824_s16 = smov %s826_s20  ;;  %19 = sbr.rel (!%p17_p6) target bundleno = 6 (0x6), region = 80 }
 0x171   :  { %351 = vsyncpa [#allocation3], 1 }
 0x172   :  { %353 = vsyncpa [#allocation3 + $0x1], 1 }
 0x173   :  { %354 = vsyncpa [#allocation5], 1 }
 0x174   :  { %356 = vsyncpa [#allocation5 + $0x1], 1 }

</bundles_post_ra>
